<compile_context>
chip_gen: v5e
topology: v5e:2x2
jax: 0.10.0
libtpu: 0.0.40
codegen_flags: <defaults>
</compile_context>

<pallas_src>
import jax
import jax.numpy as jnp
from jax.experimental import pallas as pl
from jax.experimental.pallas import tpu as pltpu

_LANE = 128
_SUBLANE = 8
_DENSE = _LANE * _SUBLANE          # 1024: minimal fully (8,128)-dense batch chunk
_PALLAS_MIN_BS = 32 * _DENSE       # below this, fused XLA elementwise is cheaper


def _cdiv(a, b):
    return -(-a // b)


def _round_up(n, m):
    return ((n + m - 1) // m) * m


def _nnfunc_kernel(w_ref, b_ref, x_ref, o_ref):
    """w_ref: SMEM (5,), b_ref: SMEM (1,),
       x_ref: VMEM (5, rows_per_tile, 128) feature-major dense slab,
       o_ref: VMEM (rows_per_tile, 128)."""
    f = x_ref[0] * w_ref[0]        # u        * w_eff[0]
    f = f + x_ref[1] * w_ref[1]    # du/dx    * w_eff[1]
    f = f + x_ref[2] * w_ref[2]    # du/dy    * w_eff[2]
    f = f + x_ref[3] * w_ref[3]    # d2u/dx2  * w_eff[3]
    f = f + x_ref[4] * w_ref[4]    # d2u/dy2  * w_eff[4]
    o_ref[...] = f + b_ref[0]


def nnfunc_forward(u, dudX, d2udX2, Xs, params, *,
                   max_tile_lanes=256 * 1024, use_pallas=None):
    """Pallas implementation of NNFunc.forward.

    u: [BS,1], dudX: [BS,2], d2udX2: [BS,2]; Xs is unused by the reference
    forward (kept for signature parity). Returns [BS] float32 (torch .squeeze()).
    """
    del Xs
    w1 = params["w1"].astype(jnp.float32)   # [5, 32]
    b1 = params["b1"].astype(jnp.float32)   # [1, 32]
    w2 = params["w2"].astype(jnp.float32)   # [32, 1]
    b2 = params["b2"].astype(jnp.float32)   # [1, 1]

    # Collapse the two activation-free Linear layers into a single affine map.
    w_eff = jnp.ravel(jnp.dot(w1, w2))          # (5,)
    b_eff = jnp.ravel(jnp.dot(b1, w2) + b2)     # (1,)

    bs = u.shape[0]
    if use_pallas is None:
        use_pallas = bs >= _PALLAS_MIN_BS

    if not use_pallas:
        # Small-batch fallback: one fused XLA elementwise op, no kernel launch.
        f = (u[:, 0] * w_eff[0]
             + dudX[:, 0] * w_eff[1] + dudX[:, 1] * w_eff[2]
             + d2udX2[:, 0] * w_eff[3] + d2udX2[:, 1] * w_eff[4]
             + b_eff[0])
        return f.astype(jnp.float32)

    # ---- tile / grid selection -------------------------------------------
    max_tile = max(_DENSE, (max_tile_lanes // _DENSE) * _DENSE)   # multiple of 1024
    bs_dense = _round_up(bs, _DENSE)                              # pad to dense unit only
    n_blocks = _cdiv(bs_dense, max_tile)
    if n_blocks == 1 and bs_dense >= 16 * _DENSE:
        n_blocks = 2                       # v7x megacore: give both TCs work
    tile = _round_up(_cdiv(bs_dense, n_blocks), _DENSE)           # divides bs_pad
    bs_pad = n_blocks * tile
    rows_per_tile = tile // _LANE          # multiple of 8 -> (8,128)-dense blocks
    nrows = bs_pad // _LANE

    # ---- fused input prep: one [5, nrows, 128] feature-major slab ---------
    x = jnp.concatenate([u.astype(jnp.float32),
                         dudX.astype(jnp.float32),
                         d2udX2.astype(jnp.float32)], axis=-1)    # [BS, 5]
    x = jnp.pad(x, ((0, bs_pad - bs), (0, 0)))                    # [bs_pad, 5]
    x = jnp.transpose(x).reshape(5, nrows, _LANE)                 # single fused copy under jit

    # ---- VMEM budget (double-buffered in + out blocks, fully dense) -------
    block_bytes = (5 + 1) * tile * 4
    vmem_limit = int(max(32 << 20, 2 * block_bytes + (4 << 20)))

    smem = pl.BlockSpec(memory_space=pltpu.MemorySpace.SMEM)
    out = pl.pallas_call(
        _nnfunc_kernel,
        out_shape=jax.ShapeDtypeStruct((nrows, _LANE), jnp.float32),
        grid=(n_blocks,),
        in_specs=[
            smem,                                                     # w_eff (SMEM)
            smem,                                                     # b_eff (SMEM)
            pl.BlockSpec((5, rows_per_tile, _LANE), lambda i: (0, i, 0)),
        ],
        out_specs=pl.BlockSpec((rows_per_tile, _LANE), lambda i: (i, 0)),
        compiler_params=pltpu.CompilerParams(
            dimension_semantics=("parallel",),
            vmem_limit_bytes=vmem_limit),
    )(w_eff, b_eff, x)

    # torch .squeeze(): -> [BS]; reshape is free (row-major batch order preserved),
    # slice drops the zero-padded tail.
    return out.reshape(bs_pad)[:bs]


def init_params(key):
    """nn.Linear-style init (uniform +-1/sqrt(fan_in)); lin2 bias zero as in the module."""
    k1, k2, k3 = jax.random.split(key, 3)
    bound1 = 1.0 / jnp.sqrt(5.0)
    bound2 = 1.0 / jnp.sqrt(32.0)
    w1 = jax.random.uniform(k1, (5, 32), jnp.float32, -bound1, bound1)
    b1 = jax.random.uniform(k2, (1, 32), jnp.float32, -bound1, bound1)
    w2 = jax.random.uniform(k3, (32, 1), jnp.float32, -bound2, bound2)
    b2 = jnp.zeros((1, 1), jnp.float32)   # nn.init.zeros_(self.lin2.bias)
    return {"w1": w1, "b1": b1, "w2": w2, "b2": b2}


def _reference(u, dudX, d2udX2, params):
    # Original two-layer math (lin2(lin1(cat(...)))) for correctness checking.
    x = jnp.concatenate([u, dudX, d2udX2], axis=-1)
    h = x @ params["w1"] + params["b1"]
    f = h @ params["w2"] + params["b2"]
    return f[:, 0]


if __name__ == "__main__":
    key = jax.random.PRNGKey(0)
    kp, ku, kd1, kd2, kx = jax.random.split(key, 5)

    params = init_params(kp)
    fwd = jax.jit(nnfunc_forward, static_argnames=("max_tile_lanes", "use_pallas"))

    # 1) Small batch, Pallas path forced (single dense block + padded tail).
    BS = 300
    u = jax.random.normal(ku, (BS, 1), jnp.float32)
    dudX = jax.random.normal(kd1, (BS, 2), jnp.float32)
    d2udX2 = jax.random.normal(kd2, (BS, 2), jnp.float32)
    Xs = jax.random.normal(kx, (BS, 2), jnp.float32)
    out = jax.block_until_ready(fwd(u, dudX, d2udX2, Xs, params, use_pallas=True))
    ref = _reference(u, dudX, d2udX2, params)
    assert out.shape == (BS,)
    assert jnp.allclose(out, ref, atol=2e-5, rtol=2e-5)

    # 2) Multi-block grid (exercises tiling, ragged-to-tile padding, parallel axis).
    BS2 = 3000
    ku2, kd12, kd22 = jax.random.split(ku, 3)
    u2 = jax.random.normal(ku2, (BS2, 1), jnp.float32)
    d12 = jax.random.normal(kd12, (BS2, 2), jnp.float32)
    d22 = jax.random.normal(kd22, (BS2, 2), jnp.float32)
    out2 = jax.block_until_ready(
        fwd(u2, d12, d22, None, params, max_tile_lanes=2048, use_pallas=True))
    ref2 = _reference(u2, d12, d22, params)
    assert out2.shape == (BS2,)
    assert jnp.allclose(out2, ref2, atol=2e-5, rtol=2e-5)

    # 3) Auto small-batch path (fused jnp fallback, no pallas_call launch).
    BS3 = 8
    out3 = jax.block_until_ready(fwd(u[:BS3], dudX[:BS3], d2udX2[:BS3], None, params))
    ref3 = _reference(u[:BS3], dudX[:BS3], d2udX2[:BS3], params)
    assert out3.shape == (BS3,)
    assert jnp.allclose(out3, ref3, atol=2e-5, rtol=2e-5)

    print("KERNEL_OK")
</pallas_src>

<mosaic_0001>
module attributes {stable_mosaic.version = 11 : i64} {
  func.func @_nnfunc_kernel(%arg0: i32, %arg1: memref<5xf32, #tpu.memory_space<smem>>, %arg2: memref<1xf32, #tpu.memory_space<smem>>, %arg3: memref<5x8x128xf32, #tpu.memory_space<vmem>>, %arg4: memref<8x128xf32, #tpu.memory_space<vmem>>) attributes {dimension_semantics = [#tpu.dimension_semantics<parallel>], iteration_bounds = array<i64: 1>, scalar_prefetch = 0 : i64, scratch_operands = 0 : i64, tpu.core_type = #tpu.core_type<tc>, window_params = [{transform_indices = @transform_0, window_bounds = array<i64: 5>}, {transform_indices = @transform_1, window_bounds = array<i64: 1>}, {transform_indices = @transform_2, window_bounds = array<i64: 5, 8, 128>}, {transform_indices = @transform_3, window_bounds = array<i64: 8, 128>}]} {
    %c0 = arith.constant 0 : index
    %c0_0 = arith.constant 0 : index
    %c0_1 = arith.constant 0 : index
    %0 = vector.load %arg3[%c0, %c0_0, %c0_1] : memref<5x8x128xf32, #tpu.memory_space<vmem>>, vector<1x8x128xf32>
    %1 = vector.shape_cast %0 : vector<1x8x128xf32> to vector<8x128xf32>
    %c0_2 = arith.constant 0 : index
    %2 = memref.load %arg1[%c0_2] : memref<5xf32, #tpu.memory_space<smem>>
    %3 = vector.broadcast %2 : f32 to vector<8x128xf32>
    %4 = arith.mulf %1, %3 : vector<8x128xf32>
    %c1 = arith.constant 1 : index
    %c0_3 = arith.constant 0 : index
    %c0_4 = arith.constant 0 : index
    %5 = vector.load %arg3[%c1, %c0_3, %c0_4] : memref<5x8x128xf32, #tpu.memory_space<vmem>>, vector<1x8x128xf32>
    %6 = vector.shape_cast %5 : vector<1x8x128xf32> to vector<8x128xf32>
    %c1_5 = arith.constant 1 : index
    %7 = memref.load %arg1[%c1_5] : memref<5xf32, #tpu.memory_space<smem>>
    %8 = vector.broadcast %7 : f32 to vector<8x128xf32>
    %9 = arith.mulf %6, %8 : vector<8x128xf32>
    %10 = arith.addf %4, %9 : vector<8x128xf32>
    %c2 = arith.constant 2 : index
    %c0_6 = arith.constant 0 : index
    %c0_7 = arith.constant 0 : index
    %11 = vector.load %arg3[%c2, %c0_6, %c0_7] : memref<5x8x128xf32, #tpu.memory_space<vmem>>, vector<1x8x128xf32>
    %12 = vector.shape_cast %11 : vector<1x8x128xf32> to vector<8x128xf32>
    %c2_8 = arith.constant 2 : index
    %13 = memref.load %arg1[%c2_8] : memref<5xf32, #tpu.memory_space<smem>>
    %14 = vector.broadcast %13 : f32 to vector<8x128xf32>
    %15 = arith.mulf %12, %14 : vector<8x128xf32>
    %16 = arith.addf %10, %15 : vector<8x128xf32>
    %c3 = arith.constant 3 : index
    %c0_9 = arith.constant 0 : index
    %c0_10 = arith.constant 0 : index
    %17 = vector.load %arg3[%c3, %c0_9, %c0_10] : memref<5x8x128xf32, #tpu.memory_space<vmem>>, vector<1x8x128xf32>
    %18 = vector.shape_cast %17 : vector<1x8x128xf32> to vector<8x128xf32>
    %c3_11 = arith.constant 3 : index
    %19 = memref.load %arg1[%c3_11] : memref<5xf32, #tpu.memory_space<smem>>
    %20 = vector.broadcast %19 : f32 to vector<8x128xf32>
    %21 = arith.mulf %18, %20 : vector<8x128xf32>
    %22 = arith.addf %16, %21 : vector<8x128xf32>
    %c4 = arith.constant 4 : index
    %c0_12 = arith.constant 0 : index
    %c0_13 = arith.constant 0 : index
    %23 = vector.load %arg3[%c4, %c0_12, %c0_13] : memref<5x8x128xf32, #tpu.memory_space<vmem>>, vector<1x8x128xf32>
    %24 = vector.shape_cast %23 : vector<1x8x128xf32> to vector<8x128xf32>
    %c4_14 = arith.constant 4 : index
    %25 = memref.load %arg1[%c4_14] : memref<5xf32, #tpu.memory_space<smem>>
    %26 = vector.broadcast %25 : f32 to vector<8x128xf32>
    %27 = arith.mulf %24, %26 : vector<8x128xf32>
    %28 = arith.addf %22, %27 : vector<8x128xf32>
    %c0_15 = arith.constant 0 : index
    %29 = memref.load %arg2[%c0_15] : memref<1xf32, #tpu.memory_space<smem>>
    %30 = vector.broadcast %29 : f32 to vector<8x128xf32>
    %31 = arith.addf %28, %30 : vector<8x128xf32>
    %c0_16 = arith.constant 0 : index
    %c0_17 = arith.constant 0 : index
    %32 = vector.load %arg4[%c0_16, %c0_17] : memref<8x128xf32, #tpu.memory_space<vmem>>, vector<8x128xf32>
    tpu.vector_store %arg4[%c0_16, %c0_17], %31 {strides = array<i32>} : memref<8x128xf32, #tpu.memory_space<vmem>>, vector<8x128xf32>,
    return
  }
  func.func @transform_0(%arg0: i32) -> i32 {
    %c0_i32 = arith.constant 0 : i32
    %c0_i32_0 = arith.constant 0 : i32
    return %c0_i32 : i32
  }
  func.func @transform_1(%arg0: i32) -> i32 {
    %c0_i32 = arith.constant 0 : i32
    %c0_i32_0 = arith.constant 0 : i32
    return %c0_i32 : i32
  }
  func.func @transform_2(%arg0: i32) -> (i32, i32, i32) {
    %c0_i32 = arith.constant 0 : i32
    %c0_i32_0 = arith.constant 0 : i32
    %c0_i32_1 = arith.constant 0 : i32
    return %c0_i32, %arg0, %c0_i32_0 : i32, i32, i32
  }
  func.func @transform_3(%arg0: i32) -> (i32, i32) {
    %c0_i32 = arith.constant 0 : i32
    %c0_i32_0 = arith.constant 0 : i32
    return %arg0, %c0_i32 : i32, i32
  }
}

</mosaic_0001>

<bundles_post_ra>
// kernel: nnfunc_forward.1
= control target key start
LH: loop header
LB: loop body
LE: loop exit
PB: predicated region body
PF: predicated region fallthrough
CT: control target
= control target key end

     0   :  { %9 = vsyncpa [#allocation4], 0  ;;  %s88_s15 = smov [#allocation3]   ;;  %s133_s0 = inlined_call_operand.vmem [shape: f32[5], index: 0, kind: input, shape index: {}]   ;;  %s134_s1 = inlined_call_operand.<no memory space> [shape: f32[1], index: 1, kind: input, shape index: {}]   ;;  %s135_s2 = inlined_call_operand.vmem [shape: f32[5,8,128], index: 2, kind: input, shape index: {}]   ;;  %s136_s3 = inlined_call_operand.vmem [shape: f32[8,128], index: 3, kind: output, shape index: {}]  }
   0x1   :  { %s15_s14 = sshll.u32 %s133_s0, 4  ;;  %s16_s14 = int_to_ptr.vmem [resolvable:$true] %s15_s14 }
   0x2   :  { %18 = dma.vmem_to_smem %s16_s14, 16, %s88_s15, [#allocation4]  }
   0x3   :  { %86 = dma.done.wait [#allocation4], 16  }
   0x4   :  { %87 = vsyncadd [#allocation4], 4294967280 }
   0x5   :  { %27 = sfence }
   0x6   :  { %s29_s16 = sld [smem:[#allocation3]]  ;;  %v28_v0 = vld [vmem:[%s135_s2] sm:$0xff]  ;;  %v65_v1 = vld [vmem:[%s135_s2 + $0x8] sm:$0xff]  ;;  %v67_v3 = vld [vmem:[%s135_s2 + $0x10] sm:$0xff]  ;;  %v57_v18 = vstv %s134_s1 }
   0x7   :  { %s66_s17 = sld [smem:[#allocation3 + $0x1]]  ;;  %v69_v6 = vld [vmem:[%s135_s2 + $0x18] sm:$0xff]  ;;  %v71_v11 = vld [vmem:[%s135_s2 + $0x20] sm:$0xff] }
   0x8   :  { %s68_s18 = sld [smem:[#allocation3 + $0x2]] }
   0x9   :  { %s70_s19 = sld [smem:[#allocation3 + $0x3]] }
   0xa   :  { %s72_s22 = sld [smem:[#allocation3 + $0x4]] }
   0xc   :  { %v30_v2 = vstv %s29_s16 }
   0xd   :  { %v31_v4 = vmul.f32 %v30_v2, %v28_v0  ;;  %v35_v5 = vstv %s66_s17 }
   0xe   :  { %v36_v7 = vmul.f32 %v65_v1, %v35_v5  ;;  %v41_v8 = vstv %s68_s18 }
   0xf   :  { %v42_v9 = vmul.f32 %v67_v3, %v41_v8  ;;  %v47_v10 = vstv %s70_s19 }
  0x10   :  { %v37_v12 = vadd.f32 %v36_v7, %v31_v4  ;;  %v48_v13 = vmul.f32 %v69_v6, %v47_v10  ;;  %v53_v14 = vstv %s72_s22 }
  0x11   :  { %v54_v16 = vmul.f32 %v71_v11, %v53_v14 }
  0x12   :  { %v43_v15 = vadd.f32 %v42_v9, %v37_v12 }
  0x14   :  { %v49_v17 = vadd.f32 %v48_v13, %v43_v15 }
  0x16   :  { %v55_v19 = vadd.f32 %v54_v16, %v49_v17 }
  0x18   :  { %v58_v20 = vadd.f32 %v57_v18, %v55_v19 }
  0x1a   :  { %59 = vst [vmem:[%s136_s3] sm:$0xff] %v58_v20 }
  0x1b   :  { %64 = vsyncpa [#allocation4], 1 }

</bundles_post_ra>
